<compile_context>
chip_gen: v6e
topology: v6e:2x2x1
jax: 0.10.0
libtpu: 0.0.40
codegen_flags: <defaults>
</compile_context>

<pallas_src>
import jax
import jax.numpy as jnp
from jax.experimental import pallas as pl
from jax.experimental.pallas import tpu as pltpu


def _hbm_identity_dma_kernel(x_hbm, o_hbm, sem):
    # One HBM->HBM DMA descriptor covering the whole array: the DMA engine
    # streams src -> dst directly; the TensorCore only issues/waits on it.
    cp = pltpu.make_async_copy(x_hbm, o_hbm, sem)
    cp.start()
    cp.wait()


def cnn_state_decoder_baseline_forward(x: jax.Array, *, materialize: bool = True) -> jax.Array:
    """Identity forward pass of CNNStateDecoderBaselineNetwork.

    materialize=False returns `x` itself (exact module semantics, fastest).
    materialize=True returns a fresh buffer with identical contents, produced
    by a single direct HBM->HBM DMA (the "benchmark contract" path).
    """
    if not materialize:
        return x

    if x.ndim == 0 or x.size == 0:
        # Nothing meaningful to DMA; identity semantics are preserved exactly.
        return x

    itemsize = jnp.dtype(x.dtype).itemsize
    total_bytes = x.size * itemsize

    return pl.pallas_call(
        _hbm_identity_dma_kernel,
        out_shape=jax.ShapeDtypeStruct(x.shape, x.dtype),
        in_specs=[pl.BlockSpec(memory_space=pl.ANY)],   # raw HBM ref, no auto-DMA
        out_specs=pl.BlockSpec(memory_space=pl.ANY),    # raw HBM ref, no auto-DMA
        scratch_shapes=[pltpu.SemaphoreType.DMA],
        cost_estimate=pl.CostEstimate(
            flops=0, transcendentals=0, bytes_accessed=2 * total_bytes),
    )(x)


if __name__ == "__main__":
    key = jax.random.PRNGKey(0)
    k1, k2, k3 = jax.random.split(key, 3)

    # 1) Typical small CNN-state activation (NCHW): single-DMA copy path.
    x1 = jax.random.normal(k1, (2, 4, 16, 16), dtype=jnp.float32)
    y1 = jax.block_until_ready(cnn_state_decoder_baseline_forward(x1))
    assert y1.shape == x1.shape and y1.dtype == x1.dtype
    assert bool(jnp.all(y1 == x1))

    # 2) Lane-misaligned shape (nothing divisible by 128): the direct DMA
    #    handles it with no alignment fallback and no padding/reshape.
    x2 = jax.random.normal(k2, (3, 5, 7, 11), dtype=jnp.float32)
    y2 = jax.block_until_ready(cnn_state_decoder_baseline_forward(x2))
    assert y2.shape == x2.shape and y2.dtype == x2.dtype
    assert bool(jnp.all(y2 == x2))

    # 3) bf16 input: bitwise-exact copy through the same DMA path.
    x3 = jax.random.normal(k3, (2, 16, 64, 64), dtype=jnp.bfloat16)
    y3 = jax.block_until_ready(cnn_state_decoder_baseline_forward(x3))
    assert y3.shape == x3.shape and y3.dtype == x3.dtype
    assert bool(jnp.all(y3 == x3))

    # 4) Pure identity (no materialization): the module's exact semantics,
    #    zero HBM traffic.
    y4 = cnn_state_decoder_baseline_forward(x1, materialize=False)
    assert y4 is x1

    print("KERNEL_OK")
</pallas_src>

<mosaic_0001>
module attributes {stable_mosaic.version = 11 : i64} {
  func.func @_hbm_identity_dma_kernel(%arg0: memref<2x4x16x16xf32, #tpu.memory_space<any>>, %arg1: memref<2x4x16x16xf32, #tpu.memory_space<any>>, %arg2: memref<!tpu.dma_semaphore, #tpu.memory_space<semaphore_mem>>) attributes {dimension_semantics = [], scalar_prefetch = 0 : i64, scratch_operands = 1 : i64, tpu.core_type = #tpu.core_type<tc>} {
    tpu.enqueue_dma source(%arg0 : memref<2x4x16x16xf32, #tpu.memory_space<any>>) target(%arg1 : memref<2x4x16x16xf32, #tpu.memory_space<any>>) target_semaphore(%arg2 : memref<!tpu.dma_semaphore, #tpu.memory_space<semaphore_mem>>)
    tpu.wait_dma2 semaphore(%arg2 : memref<!tpu.dma_semaphore, #tpu.memory_space<semaphore_mem>>) src(%arg0 : memref<2x4x16x16xf32, #tpu.memory_space<any>>) dst(%arg1 : memref<2x4x16x16xf32, #tpu.memory_space<any>>)
    return
  }
}

</mosaic_0001>

<bundles_post_ra>
// kernel: tpu_custom_call.1
= control target key start
LH: loop header
LB: loop body
LE: loop exit
PB: predicated region body
PF: predicated region fallthrough
CT: control target
= control target key end

     0   :  { %s30_s6 = smov [#allocation2]   ;;  %s31_s7 = smov 131072   ;;  %s49_s0 = inlined_call_operand.hbm [shape: f32[2,4,16,16], index: 0, kind: input, shape index: {}]   ;;  %s50_s1 = inlined_call_operand.hbm [shape: f32[2,4,16,16], index: 1, kind: output, shape index: {}]  }
   0x1   :  { %s32_s8 = smov 0  }
   0x2   :  { %12 = dma.general %s49_s0, 2048, %s50_s1, %s30_s6, %s31_s7, [#allocation4], %s32_s8, 0  }
   0x3   :  { %28 = dma.done.wait [#allocation2], 2048 }
   0x4   :  { %29 = vsyncadd [#allocation2], 4294965248 }
   0x5   :  { %18 = vsyncmov [#allocation2] }
   0x8   :  { %s19_s13 = vpop.sfrf %18 }
   0x9   :  { %p24_p0 = scmp.ne.s32.totalorder %s19_s13, 0 }
   0xb   :  { %23 = shalt.err (%p24_p0)  }

</bundles_post_ra>
